<compile_context>
chip_gen: v6e
topology: v6e:2x2x1
jax: 0.10.0
libtpu: 0.0.40
codegen_flags: <defaults>
</compile_context>

<pallas_src>
import jax
import jax.numpy as jnp
from jax import lax
from jax.experimental import pallas as pl
from jax.experimental.pallas import tpu as pltpu


def _round_up(x, m):
    return ((x + m - 1) // m) * m


def _cross_attention_kernel(text_ref, img_ref,
                            wt_w_ref, wt_b_ref,
                            wi_w_ref, wi_b_ref,
                            text_att_ref, img_att_ref):
    cdt = img_ref.dtype            # MXU operand dtype (native rate for bf16)
    text = text_ref[...]           # (N, Td_p)
    img = img_ref[...]             # (N, Id_p)

    # text_proj = text @ Wt.T + bt — contract last dims, no transpose.
    text_proj = lax.dot_general(
        text, wt_w_ref[...],
        dimension_numbers=(((1,), (1,)), ((), ())),
        preferred_element_type=jnp.float32) + wt_b_ref[...]       # (N, Id_p)

    # img_proj = img @ Wi.T + bi
    img_proj = lax.dot_general(
        img, wi_w_ref[...],
        dimension_numbers=(((1,), (1,)), ((), ())),
        preferred_element_type=jnp.float32) + wi_b_ref[...]       # (N, Td_p)

    # scores[i, j] = img[i] . text_proj[j]  — contract last dims (no .T).
    # Keep MXU operands in the input dtype (bf16 stays bf16, f32 stays f32).
    scores = lax.dot_general(
        img, text_proj.astype(cdt),
        dimension_numbers=(((1,), (1,)), ((), ())),
        preferred_element_type=jnp.float32)                        # (N, N)

    # --- softmax over axis 0 (per column), max-stabilized, exact division ---
    m0 = jnp.max(scores, axis=0, keepdims=True)
    e0 = jnp.exp(scores - m0)
    a = e0 / jnp.sum(e0, axis=0, keepdims=True)

    # text_att = a @ img_proj (bf16 operands when inputs are bf16).
    text_att_ref[...] = jnp.dot(
        a.astype(cdt), img_proj.astype(cdt),
        preferred_element_type=jnp.float32).astype(text_att_ref.dtype)

    # --- softmax(scores.T, dim=0) == softmax(scores, axis=1), transposed ---
    # (a/e0 are dead here, so at most ~3 N^2 buffers are live at once.)
    m1 = jnp.max(scores, axis=1, keepdims=True)
    e1 = jnp.exp(scores - m1)
    b = e1 / jnp.sum(e1, axis=1, keepdims=True)

    # img_att = b.T @ text_proj — fold the .T into the contraction (LHS dim 0)
    # so no N x N transpose is materialized.
    img_att_ref[...] = lax.dot_general(
        b.astype(cdt), text_proj.astype(cdt),
        dimension_numbers=(((0,), (0,)), ((), ())),
        preferred_element_type=jnp.float32).astype(img_att_ref.dtype)


def make_cross_attention(wt_w, wt_b, wi_w, wi_b):
    """Pads the Linear parameters ONCE (lane-dense, multiples of 128) and
    returns a jitted forward(text_features, img_features) function."""
    img_dim, text_dim = wt_w.shape            # Wt: (img_dim, text_dim)
    assert wi_w.shape == (text_dim, img_dim)

    td_p = _round_up(text_dim, 128)
    id_p = _round_up(img_dim, 128)

    # One-time parameter padding (parameters are constants across calls).
    wt_w_p = jnp.pad(wt_w, ((0, id_p - img_dim), (0, td_p - text_dim)))
    wi_w_p = jnp.pad(wi_w, ((0, td_p - text_dim), (0, id_p - img_dim)))
    wt_b_p = jnp.pad(wt_b, (0, id_p - img_dim)).reshape(1, id_p)
    wi_b_p = jnp.pad(wi_b, (0, td_p - text_dim)).reshape(1, td_p)

    # Generation-aware VMEM ceiling (leave headroom for Mosaic internals).
    try:
        vmem_cap = int(pltpu.get_tpu_info().vmem_capacity_bytes)
    except Exception:      # interpret mode / no TPU visible at build time
        vmem_cap = 128 << 20
    vmem_ceiling = min(vmem_cap - (8 << 20), (vmem_cap * 4) // 5)

    @jax.jit
    def forward(text_features, img_features):
        n, _ = text_features.shape
        n_img, _ = img_features.shape
        assert n == n_img, "torch.mm in the reference requires N_text == N_img"

        # Lane-dense padding of the activations only (weights pre-padded).
        text_p = jnp.pad(text_features, ((0, 0), (0, td_p - text_dim)))
        img_p = jnp.pad(img_features, ((0, 0), (0, id_p - img_dim)))

        # Rough in-kernel f32 footprint: activations/projections/outputs,
        # weights, and ~3 live N x N buffers.
        f32 = 4
        vmem_bytes = f32 * (
            3 * n * td_p + 3 * n * id_p + 2 * td_p * id_p
            + 3 * n * n + td_p + id_p)
        vmem_limit = int(min(max(2 * vmem_bytes, 32 << 20), vmem_ceiling))

        in_bytes = sum(int(x.size) * x.dtype.itemsize
                       for x in (text_p, img_p, wt_w_p, wt_b_p, wi_w_p, wi_b_p))
        out_bytes = (n * td_p) * text_features.dtype.itemsize \
            + (n * id_p) * img_features.dtype.itemsize
        cost = pl.CostEstimate(
            # Padded dims: matches what the kernel actually executes.
            flops=4 * n * td_p * id_p + 4 * n * n * id_p + 2 * n * n * td_p,
            transcendentals=2 * n * n,
            bytes_accessed=in_bytes + out_bytes,
        )

        vmem = pl.BlockSpec(memory_space=pltpu.MemorySpace.VMEM)
        text_att_p, img_att_p = pl.pallas_call(
            _cross_attention_kernel,
            out_shape=(jax.ShapeDtypeStruct((n, td_p), text_features.dtype),
                       jax.ShapeDtypeStruct((n, id_p), img_features.dtype)),
            in_specs=[vmem] * 6,
            out_specs=(vmem, vmem),
            compiler_params=pltpu.CompilerParams(vmem_limit_bytes=vmem_limit),
            cost_estimate=cost,
        )(text_p, img_p, wt_w_p, wt_b_p, wi_w_p, wi_b_p)

        # Slice the lane padding off (skip if consumer accepts padded outputs).
        return text_att_p[:, :text_dim], img_att_p[:, :img_dim]

    return forward


def _reference(text, img, wt_w, wt_b, wi_w, wi_b):
    # Highest-precision reference so the f32-accurate kernel path (multi-pass
    # MXU) is compared against f32-accurate XLA matmuls, not bf16 one-pass.
    hp = jax.lax.Precision.HIGHEST
    text_proj = jnp.dot(text, wt_w.T, precision=hp) + wt_b
    img_proj = jnp.dot(img, wi_w.T, precision=hp) + wi_b
    scores = jnp.dot(img, text_proj.T, precision=hp)
    a = jax.nn.softmax(scores, axis=0)
    text_att = jnp.dot(a, img_proj, precision=hp)
    b = jax.nn.softmax(scores.T, axis=0)
    img_att = jnp.dot(b, text_proj, precision=hp)
    return text_att, img_att


if __name__ == "__main__":
    N = 8           # shared sequence length (torch.mm constraint)
    TEXT_DIM = 32
    IMG_DIM = 16

    key = jax.random.PRNGKey(0)
    k_text, k_img, k_wtw, k_wtb, k_wiw, k_wib = jax.random.split(key, 6)

    text_features = jax.random.normal(k_text, (N, TEXT_DIM), dtype=jnp.float32)
    img_features = jax.random.normal(k_img, (N, IMG_DIM), dtype=jnp.float32)

    # Deterministic "nn.Linear"-style init: U(-1/sqrt(fan_in), 1/sqrt(fan_in)).
    bt = 1.0 / jnp.sqrt(jnp.float32(TEXT_DIM))
    bi = 1.0 / jnp.sqrt(jnp.float32(IMG_DIM))
    wt_w = jax.random.uniform(k_wtw, (IMG_DIM, TEXT_DIM), jnp.float32, -bt, bt)
    wt_b = jax.random.uniform(k_wtb, (IMG_DIM,), jnp.float32, -bt, bt)
    wi_w = jax.random.uniform(k_wiw, (TEXT_DIM, IMG_DIM), jnp.float32, -bi, bi)
    wi_b = jax.random.uniform(k_wib, (TEXT_DIM,), jnp.float32, -bi, bi)

    forward = make_cross_attention(wt_w, wt_b, wi_w, wi_b)
    text_att, img_att = jax.block_until_ready(
        forward(text_features, img_features))

    ref_text, ref_img = _reference(text_features, img_features,
                                   wt_w, wt_b, wi_w, wi_b)
    assert text_att.shape == (N, TEXT_DIM) and img_att.shape == (N, IMG_DIM)
    # Tolerance covers MXU multi-pass-f32 vs XLA 'highest' rounding and EUP
    # exp ULP differences; any real math bug would be orders of magnitude off.
    assert jnp.allclose(text_att, ref_text, atol=1e-3, rtol=1e-3), (
        float(jnp.max(jnp.abs(text_att - ref_text))))
    assert jnp.allclose(img_att, ref_img, atol=1e-3, rtol=1e-3), (
        float(jnp.max(jnp.abs(img_att - ref_img))))

    print("KERNEL_OK")
</pallas_src>

<mosaic_0001>
module attributes {stable_mosaic.version = 11 : i64} {
  func.func @_cross_attention_kernel(%arg0: memref<8x128xf32, #tpu.memory_space<vmem>>, %arg1: memref<8x128xf32, #tpu.memory_space<vmem>>, %arg2: memref<128x128xf32, #tpu.memory_space<vmem>>, %arg3: memref<1x128xf32, #tpu.memory_space<vmem>>, %arg4: memref<128x128xf32, #tpu.memory_space<vmem>>, %arg5: memref<1x128xf32, #tpu.memory_space<vmem>>, %arg6: memref<8x128xf32, #tpu.memory_space<vmem>>, %arg7: memref<8x128xf32, #tpu.memory_space<vmem>>) attributes {dimension_semantics = [], scalar_prefetch = 0 : i64, scratch_operands = 0 : i64, tpu.core_type = #tpu.core_type<tc>} {
    %c0 = arith.constant 0 : index
    %c0_0 = arith.constant 0 : index
    %0 = vector.load %arg0[%c0, %c0_0] : memref<8x128xf32, #tpu.memory_space<vmem>>, vector<8x128xf32>
    %c0_1 = arith.constant 0 : index
    %c0_2 = arith.constant 0 : index
    %1 = vector.load %arg1[%c0_1, %c0_2] : memref<8x128xf32, #tpu.memory_space<vmem>>, vector<8x128xf32>
    %c0_3 = arith.constant 0 : index
    %c0_4 = arith.constant 0 : index
    %2 = vector.load %arg2[%c0_3, %c0_4] : memref<128x128xf32, #tpu.memory_space<vmem>>, vector<128x128xf32>
    %cst = arith.constant dense<0.000000e+00> : vector<8x128xf32>
    %3 = tpu.matmul %0, %2, %cst {dimension_numbers = #tpu.dot_dimension_numbers<[1], [1], [0], [0], [0, 0, 1, 0], [], []>} : vector<8x128xf32>, vector<128x128xf32>, vector<8x128xf32> -> vector<8x128xf32>
    %c0_5 = arith.constant 0 : index
    %c0_6 = arith.constant 0 : index
    %4 = vector.load %arg3[%c0_5, %c0_6] : memref<1x128xf32, #tpu.memory_space<vmem>>, vector<1x128xf32>
    %5 = vector.broadcast %4 : vector<1x128xf32> to vector<8x128xf32>
    %6 = arith.addf %3, %5 : vector<8x128xf32>
    %c0_7 = arith.constant 0 : index
    %c0_8 = arith.constant 0 : index
    %7 = vector.load %arg4[%c0_7, %c0_8] : memref<128x128xf32, #tpu.memory_space<vmem>>, vector<128x128xf32>
    %cst_9 = arith.constant dense<0.000000e+00> : vector<8x128xf32>
    %8 = tpu.matmul %1, %7, %cst_9 {dimension_numbers = #tpu.dot_dimension_numbers<[1], [1], [0], [0], [0, 0, 1, 0], [], []>} : vector<8x128xf32>, vector<128x128xf32>, vector<8x128xf32> -> vector<8x128xf32>
    %c0_10 = arith.constant 0 : index
    %c0_11 = arith.constant 0 : index
    %9 = vector.load %arg5[%c0_10, %c0_11] : memref<1x128xf32, #tpu.memory_space<vmem>>, vector<1x128xf32>
    %10 = vector.broadcast %9 : vector<1x128xf32> to vector<8x128xf32>
    %11 = arith.addf %8, %10 : vector<8x128xf32>
    %cst_12 = arith.constant dense<0.000000e+00> : vector<8x8xf32>
    %12 = tpu.matmul %1, %6, %cst_12 {dimension_numbers = #tpu.dot_dimension_numbers<[1], [1], [0], [0], [0, 0, 1, 0], [], []>} : vector<8x128xf32>, vector<8x128xf32>, vector<8x8xf32> -> vector<8x8xf32>
    %cst_13 = arith.constant dense<0xFF800000> : vector<8xf32>
    %13 = vector.multi_reduction <maximumf>, %12, %cst_13 [0] : vector<8x8xf32> to vector<8xf32>
    %14 = vector.shape_cast %13 : vector<8xf32> to vector<1x8xf32>
    %15 = vector.broadcast %14 : vector<1x8xf32> to vector<8x8xf32>
    %16 = arith.subf %12, %15 : vector<8x8xf32>
    %17 = math.exp %16 : vector<8x8xf32>
    %cst_14 = arith.constant dense<0.000000e+00> : vector<8xf32>
    %18 = vector.multi_reduction <add>, %17, %cst_14 [0] : vector<8x8xf32> to vector<8xf32>
    %19 = vector.shape_cast %18 : vector<8xf32> to vector<1x8xf32>
    %20 = vector.broadcast %19 : vector<1x8xf32> to vector<8x8xf32>
    %21 = arith.divf %17, %20 : vector<8x8xf32>
    %cst_15 = arith.constant dense<0.000000e+00> : vector<8x128xf32>
    %22 = tpu.matmul %21, %11, %cst_15 {dimension_numbers = #tpu.dot_dimension_numbers<[1], [0], [0], [1], [0, 0, 1, 1], [], []>} : vector<8x8xf32>, vector<8x128xf32>, vector<8x128xf32> -> vector<8x128xf32>
    %c0_16 = arith.constant 0 : index
    %c0_17 = arith.constant 0 : index
    %23 = vector.load %arg6[%c0_16, %c0_17] : memref<8x128xf32, #tpu.memory_space<vmem>>, vector<8x128xf32>
    tpu.vector_store %arg6[%c0_16, %c0_17], %22 {strides = array<i32>} : memref<8x128xf32, #tpu.memory_space<vmem>>, vector<8x128xf32>,
    %cst_18 = arith.constant dense<0xFF800000> : vector<8xf32>
    %24 = vector.multi_reduction <maximumf>, %12, %cst_18 [1] : vector<8x8xf32> to vector<8xf32>
    %25 = vector.shape_cast %24 : vector<8xf32> to vector<8x1xf32>
    %26 = vector.broadcast %25 : vector<8x1xf32> to vector<8x8xf32>
    %27 = arith.subf %12, %26 : vector<8x8xf32>
    %28 = math.exp %27 : vector<8x8xf32>
    %cst_19 = arith.constant dense<0.000000e+00> : vector<8xf32>
    %29 = vector.multi_reduction <add>, %28, %cst_19 [1] : vector<8x8xf32> to vector<8xf32>
    %30 = vector.shape_cast %29 : vector<8xf32> to vector<8x1xf32>
    %31 = vector.broadcast %30 : vector<8x1xf32> to vector<8x8xf32>
    %32 = arith.divf %28, %31 : vector<8x8xf32>
    %cst_20 = arith.constant dense<0.000000e+00> : vector<8x128xf32>
    %33 = tpu.matmul %32, %6, %cst_20 {dimension_numbers = #tpu.dot_dimension_numbers<[0], [0], [1], [1], [0, 1, 1, 1], [], []>} : vector<8x8xf32>, vector<8x128xf32>, vector<8x128xf32> -> vector<8x128xf32>
    %c0_21 = arith.constant 0 : index
    %c0_22 = arith.constant 0 : index
    %34 = vector.load %arg7[%c0_21, %c0_22] : memref<8x128xf32, #tpu.memory_space<vmem>>, vector<8x128xf32>
    tpu.vector_store %arg7[%c0_21, %c0_22], %33 {strides = array<i32>} : memref<8x128xf32, #tpu.memory_space<vmem>>, vector<8x128xf32>,
    return
  }
}

</mosaic_0001>

<bundles_post_ra>
// kernel: forward.1
= control target key start
LH: loop header
LB: loop body
LE: loop exit
PB: predicated region body
PF: predicated region fallthrough
CT: control target
= control target key end

     0   :  { %13 = vsyncpa [#allocation3], 0  ;;  %s908_s0 = inlined_call_operand.vmem [shape: f32[8,128], index: 0, kind: input, shape index: {}]   ;;  %s909_s1 = inlined_call_operand.vmem [shape: f32[8,128], index: 1, kind: input, shape index: {}]   ;;  %s910_s2 = inlined_call_operand.hbm [shape: f32[128,128], index: 2, kind: input, shape index: {}]   ;;  %s911_s3 = inlined_call_operand.vmem [shape: f32[1,128], index: 3, kind: input, shape index: {}]   ;;  %s912_s4 = inlined_call_operand.hbm [shape: f32[128,128], index: 4, kind: input, shape index: {}]   ;;  %s913_s5 = inlined_call_operand.vmem [shape: f32[1,128], index: 5, kind: input, shape index: {}]   ;;  %s914_s6 = inlined_call_operand.hbm [shape: f32[8,128], index: 6, kind: output, shape index: {0}]   ;;  %s915_s7 = inlined_call_operand.hbm [shape: f32[8,128], index: 7, kind: output, shape index: {1}]  }
   0x1   :  { %14 = vsyncpa [#allocation6], 0 }
   0x2   :  { %15 = vsyncpa [#allocation4], 0 }
   0x3   :  { %16 = vsyncpa [#allocation9], 0  ;;  %s786_s24 = smov [#allocation2]  }
   0x4   :  { %s26_s25 = sshll.u32 %s786_s24, 4  ;;  %s27_s25 = int_to_ptr.vmem [resolvable:$true] %s26_s25 }
   0x5   :  { %s706_s26 = scalar_lea.vmem %s27_s25, 2048  ;;  %p711_p1 = scmp.lt.s32.totalorder %s27_s25, %s27_s25 }
   0x6   :  { %p707_p0 = scmp.ne.s32.totalorder %s27_s25, %s706_s26  ;;  %p712_p2 = scmp.lt.s32.totalorder %s706_s26, %s706_s26 }
   0x8   :  { %p713_p3 = por %p712_p2, %p711_p1 }
   0xa   :  { %p714_p4 = pnand %p713_p3, %p707_p0 }
   0xc   :  { %717 = shalt.err (!%p714_p4)
}
   0xd   :  { %s787_s27 = smov 128   ;;  %s788_s28 = smov 8  }
   0xe   :  { %32 = dma.hbm_to_vmem [thread:$0]  %s910_s2, 2048, %s27_s25, [#allocation3], %s787_s27, %s787_s27, %s788_s28  }
   0xf   :  { %s789_s8 = smov [#allocation5]  }
  0x10   :  { %s40_s9 = sshll.u32 %s789_s8, 4  ;;  %s41_s9 = int_to_ptr.vmem [resolvable:$true] %s40_s9 }
  0x11   :  { %s726_s10 = scalar_lea.vmem %s41_s9, 2048  ;;  %p731_p6 = scmp.lt.s32.totalorder %s41_s9, %s41_s9 }
  0x12   :  { %p727_p5 = scmp.ne.s32.totalorder %s41_s9, %s726_s10  ;;  %p732_p7 = scmp.lt.s32.totalorder %s726_s10, %s726_s10 }
  0x14   :  { %p733_p8 = por %p732_p7, %p731_p6 }
  0x16   :  { %p734_p9 = pnand %p733_p8, %p727_p5 }
  0x18   :  { %737 = shalt.err (!%p734_p9)
}
  0x19   :  { %46 = dma.hbm_to_vmem [thread:$0]  %s912_s4, 2048, %s41_s9, [#allocation6], %s787_s27, %s787_s27, %s788_s28  }
  0x1a   :  { %778 = dma.done.wait [#allocation3], 2048  }
  0x1b   :  { %779 = vsyncadd [#allocation3], 4294965248 }
  0x1c   :  { %780 = dma.done.wait [#allocation6], 2048  }
  0x1d   :  { %781 = vsyncadd [#allocation6], 4294965248  ;;  %v790_v0 = vmov 0.0   ;;  %vm791_vm0 = vmmov 0   ;;  %v72_v1 = vld [vmem:[#allocation2 + $0x78] sm:$0xff]  ;;  %v71_v2 = vld [vmem:[#allocation2 + $0x70] sm:$0xff] }
  0x1e   :  { %597 = vmatprep.subr.mxu0 %v790_v0  ;;  %629 = vmatprep.mubr.msk.f32.mxu0 %vm791_vm0, %v790_v0  ;;  %v70_v3 = vld [vmem:[#allocation2 + $0x68] sm:$0xff]  ;;  %v69_v4 = vld [vmem:[#allocation2 + $0x60] sm:$0xff]  ;;  %v68_v5 = vld [vmem:[#allocation2 + $0x58] sm:$0xff]  ;;  %vm313_vm1 = vcmask 64512  }
  0x1f   :  { %632 = vmatprep.subr.mxu1 %v790_v0  ;;  %664 = vmatprep.mubr.msk.f32.mxu1 %vm791_vm0, %v790_v0  ;;  %v67_v6 = vld [vmem:[#allocation2 + $0x50] sm:$0xff]  ;;  %v66_v7 = vld [vmem:[#allocation2 + $0x48] sm:$0xff]  ;;  %v65_v8 = vld [vmem:[#allocation2 + $0x40] sm:$0xff] }
  0x20   :  { %598 = vmatpush3.xpose.msra.mxu0 %v72_v1  ;;  %v64_v9 = vld [vmem:[#allocation2 + $0x38] sm:$0xff]  ;;  %v63_v10 = vld [vmem:[#allocation2 + $0x30] sm:$0xff]  ;;  %v62_v11 = vld [vmem:[#allocation2 + $0x28] sm:$0xff] }
  0x21   :  { %599 = vmatprep.subr.mxu0 %v790_v0  ;;  %v61_v12 = vld [vmem:[#allocation2 + $0x20] sm:$0xff]  ;;  %v60_v13 = vld [vmem:[#allocation2 + $0x18] sm:$0xff]  ;;  %v59_v14 = vld [vmem:[#allocation2 + $0x10] sm:$0xff] }
  0x22   :  { %v58_v15 = vld [vmem:[#allocation2 + $0x8] sm:$0xff]  ;;  %v57_v16 = vld [vmem:[#allocation2] sm:$0xff]  ;;  %v165_v18 = vld [vmem:[#allocation5 + $0x78] sm:$0xff] }
  0x23   :  { %v55_v17 = vld [vmem:[%s908_s0] sm:$0xff]  ;;  %633 = vmatpush3.xpose.msra.mxu1 %v165_v18  ;;  %v164_v19 = vld [vmem:[#allocation5 + $0x70] sm:$0xff]  ;;  %v163_v20 = vld [vmem:[#allocation5 + $0x68] sm:$0xff] }
  0x24   :  { %600 = vmatpush3.xpose.msra.mxu0 %v71_v2  ;;  %634 = vmatprep.subr.mxu1 %v790_v0  ;;  %v162_v21 = vld [vmem:[#allocation5 + $0x60] sm:$0xff]  ;;  %v161_v22 = vld [vmem:[#allocation5 + $0x58] sm:$0xff]  ;;  %v160_v23 = vld [vmem:[#allocation5 + $0x50] sm:$0xff] }
  0x25   :  { %601 = vmatprep.subr.mxu0 %v790_v0  ;;  %v159_v24 = vld [vmem:[#allocation5 + $0x48] sm:$0xff]  ;;  %v158_v25 = vld [vmem:[#allocation5 + $0x40] sm:$0xff]  ;;  %v157_v26 = vld [vmem:[#allocation5 + $0x38] sm:$0xff] }
  0x26   :  { %v156_v27 = vld [vmem:[#allocation5 + $0x30] sm:$0xff]  ;;  %v155_v28 = vld [vmem:[#allocation5 + $0x28] sm:$0xff]  ;;  %v154_v29 = vld [vmem:[#allocation5 + $0x20] sm:$0xff] }
  0x27   :  { %635 = vmatpush3.xpose.msra.mxu1 %v164_v19  ;;  %v153_v30 = vld [vmem:[#allocation5 + $0x18] sm:$0xff]  ;;  %v152_v31 = vld [vmem:[#allocation5 + $0x10] sm:$0xff]  ;;  %v151_v32 = vld [vmem:[#allocation5 + $0x8] sm:$0xff] }
  0x28   :  { %602 = vmatpush3.xpose.msra.mxu0 %v70_v3  ;;  %636 = vmatprep.subr.mxu1 %v790_v0  ;;  %v150_v33 = vld [vmem:[#allocation5] sm:$0xff] }
  0x29   :  { %603 = vmatprep.subr.mxu0 %v790_v0  ;;  %v56_v34 = vld [vmem:[%s909_s1] sm:$0xff] }
  0x2a   :  { %v553_v35 = vld [vmem:[%s911_s3] ss:$0 sm:$0xff]  ;;  %s792_s3 = smov [#allocation7]  }
  0x2b   :  { %637 = vmatpush3.xpose.msra.mxu1 %v163_v20  ;;  %v554_v39 = vld [vmem:[%s913_s5] ss:$0 sm:$0xff]  ;;  %s529_s5 = sshll.u32 %s792_s3, 4  ;;  %s530_s5 = int_to_ptr.vmem [resolvable:$true] %s529_s5 }
  0x2c   :  { %604 = vmatpush3.xpose.msra.mxu0 %v69_v4  ;;  %638 = vmatprep.subr.mxu1 %v790_v0  ;;  %s738_s17 = scalar_lea.vmem %s530_s5, 128  ;;  %p743_p11 = scmp.lt.s32.totalorder %s530_s5, %s530_s5 }
  0x2d   :  { %605 = vmatprep.subr.mxu0 %v790_v0  ;;  %p739_p10 = scmp.ne.s32.totalorder %s530_s5, %s738_s17  ;;  %p744_p12 = scmp.lt.s32.totalorder %s738_s17, %s738_s17 }
  0x2f   :  { %639 = vmatpush3.xpose.msra.mxu1 %v162_v21  ;;  %p745_p13 = por %p744_p12, %p743_p11 }
  0x30   :  { %606 = vmatpush3.xpose.msra.mxu0 %v68_v5  ;;  %640 = vmatprep.subr.mxu1 %v790_v0 }
  0x31   :  { %607 = vmatprep.subr.mxu0 %v790_v0  ;;  %p746_p0 = pnand %p745_p13, %p739_p10 }
  0x33   :  { %641 = vmatpush3.xpose.msra.mxu1 %v161_v22 }
  0x34   :  { %608 = vmatpush3.xpose.msra.mxu0 %v67_v6  ;;  %642 = vmatprep.subr.mxu1 %v790_v0 }
  0x35   :  { %609 = vmatprep.subr.mxu0 %v790_v0 }
  0x37   :  { %643 = vmatpush3.xpose.msra.mxu1 %v160_v23 }
  0x38   :  { %610 = vmatpush3.xpose.msra.mxu0 %v66_v7  ;;  %644 = vmatprep.subr.mxu1 %v790_v0 }
  0x39   :  { %611 = vmatprep.subr.mxu0 %v790_v0 }
  0x3b   :  { %645 = vmatpush3.xpose.msra.mxu1 %v159_v24 }
  0x3c   :  { %612 = vmatpush3.xpose.msra.mxu0 %v65_v8  ;;  %646 = vmatprep.subr.mxu1 %v790_v0 }
  0x3d   :  { %613 = vmatprep.subr.mxu0 %v790_v0 }
  0x3f   :  { %647 = vmatpush3.xpose.msra.mxu1 %v158_v25 }
  0x40   :  { %614 = vmatpush3.xpose.msra.mxu0 %v64_v9  ;;  %648 = vmatprep.subr.mxu1 %v790_v0 }
  0x41   :  { %615 = vmatprep.subr.mxu0 %v790_v0 }
  0x43   :  { %649 = vmatpush3.xpose.msra.mxu1 %v157_v26 }
  0x44   :  { %616 = vmatpush3.xpose.msra.mxu0 %v63_v10  ;;  %650 = vmatprep.subr.mxu1 %v790_v0 }
  0x45   :  { %617 = vmatprep.subr.mxu0 %v790_v0 }
  0x47   :  { %651 = vmatpush3.xpose.msra.mxu1 %v156_v27 }
  0x48   :  { %618 = vmatpush3.xpose.msra.mxu0 %v62_v11  ;;  %652 = vmatprep.subr.mxu1 %v790_v0 }
  0x49   :  { %619 = vmatprep.subr.mxu0 %v790_v0 }
  0x4b   :  { %653 = vmatpush3.xpose.msra.mxu1 %v155_v28 }
  0x4c   :  { %620 = vmatpush3.xpose.msra.mxu0 %v61_v12  ;;  %654 = vmatprep.subr.mxu1 %v790_v0 }
  0x4d   :  { %621 = vmatprep.subr.mxu0 %v790_v0 }
  0x4f   :  { %655 = vmatpush3.xpose.msra.mxu1 %v154_v29 }
  0x50   :  { %622 = vmatpush3.xpose.msra.mxu0 %v60_v13  ;;  %656 = vmatprep.subr.mxu1 %v790_v0 }
  0x51   :  { %623 = vmatprep.subr.mxu0 %v790_v0 }
  0x53   :  { %657 = vmatpush3.xpose.msra.mxu1 %v153_v30 }
  0x54   :  { %624 = vmatpush3.xpose.msra.mxu0 %v59_v14  ;;  %658 = vmatprep.subr.mxu1 %v790_v0 }
  0x55   :  { %625 = vmatprep.subr.mxu0 %v790_v0 }
  0x57   :  { %659 = vmatpush3.xpose.msra.mxu1 %v152_v31 }
  0x58   :  { %626 = vmatpush3.xpose.msra.mxu0 %v58_v15  ;;  %660 = vmatprep.subr.mxu1 %v790_v0 }
  0x59   :  { %627 = vmatprep.subr.mxu0 %v790_v0 }
  0x5b   :  { %661 = vmatpush3.xpose.msra.mxu1 %v151_v32 }
  0x5c   :  { %628 = vmatpush3.xpose.msra.mxu0 %v57_v16  ;;  %662 = vmatprep.subr.mxu1 %v790_v0 }
  0x5d   :  { %667 = vmatprep.subr.mxu0 %v790_v0 }
  0x5f   :  { %630 = vmatmul.mubr.f32.vlgmr.msra.gmra.mxu0 %v55_v17  ;;  %663 = vmatpush3.xpose.msra.mxu1 %v150_v33 }
  0x60   :  { %669 = vmatprep.mubr.msk.f32.mxu0 %vm791_vm0, %v790_v0  ;;  %672 = vmatprep.subr.mxu1 %v790_v0 }
  0x62   :  { %665 = vmatmul.mubr.f32.vlgmr.msra.gmra.mxu1 %v56_v34 }
  0x63   :  { %674 = vmatprep.mubr.msk.f32.mxu1 %vm791_vm0, %v790_v0 }
 0x11f   :  { %v146_v36 = vpop.f32.mrf.mxu0 }
 0x120   :  { %v147_v37 = vadd.f32 %v553_v35, %v146_v36 }
 0x121   :  { %v631_v38 = vpop.f32.mrf.mxu0 }
 0x122   :  { %668 = vmatpush3.xpose.msra.mxu0 %v147_v37  ;;  %v239_v40 = vpop.f32.mrf.mxu1 }
 0x123   :  { %677 = vmatprep.subr.mxu0 %v790_v0  ;;  %v240_v41 = vadd.f32 %v554_v39, %v239_v40 }
 0x124   :  { %v666_v42 = vpop.f32.mrf.mxu1 }
 0x125   :  { %670 = vmatmul.mubr.f32.vlgmr.msra.gmra.mxu0 %v56_v34  ;;  %673 = vmatpush3.msra.mxu1 %v240_v41 }
 0x126   :  { %678 = vmatpush3.msra.mxu0 %v147_v37  ;;  %679 = vmatprep.mubr.msk.f32.mxu0 %vm791_vm0, %v790_v0 }
 0x1e5   :  { %v309_v43 = vpop.f32.mrf.mxu0 }
 0x1e6   :  { %v314_v44 = vsel %vm313_vm1, %v309_v43, -inf }
 0x1e7   :  { %407 = vmax.xlane.f32.xlu0 %v314_v44  ;;  %v315_v45 = vrot.slane %v314_v44, 4  ;;  %v671_v46 = vpop.f32.mrf.mxu0 }
 0x1e9   :  { %v316_v47 = vmax.f32 %v314_v44, %v315_v45 }
 0x1eb   :  { %v317_v48 = vrot.slane %v316_v47, 2 }
 0x1ed   :  { %v318_v49 = vmax.f32 %v316_v47, %v317_v48 }
 0x1ef   :  { %v319_v50 = vrot.slane %v318_v49, 1 }
 0x1f1   :  { %v320_v51 = vmax.f32 %v318_v49, %v319_v50 }
 0x1f3   :  { %v321_v52 = vsub.f32 %v309_v43, %v320_v51 }
 0x1f5   :  { %v322_v53 = vmul.f32 1.442695, %v321_v52 }
 0x1f7   :  { %690 = vpow2.f32 %v322_v53 }
 0x204   :  { %v691_v54 = vpop.eup %690 }
 0x205   :  { %v324_v55 = vsel %vm313_vm1, %v691_v54, 0.0 }
 0x206   :  { %v325_v56 = vrot.slane %v324_v55, 4 }
 0x208   :  { %v326_v57 = vadd.f32 %v325_v56, %v324_v55 }
 0x20a   :  { %v327_v58 = vrot.slane %v326_v57, 2 }
 0x20c   :  { %v328_v59 = vadd.f32 %v327_v58, %v326_v57 }
 0x20e   :  { %v329_v60 = vrot.slane %v328_v59, 1 }
 0x210   :  { %v330_v61 = vadd.f32 %v329_v60, %v328_v59 }
 0x212   :  { %692 = vrcp.f32 %v330_v61 }
 0x21f   :  { %v693_v62 = vpop.eup %692 }
 0x220   :  { %v332_v63 = vmul.f32 %v693_v62, %v691_v54 }
 0x222   :  { %675 = vmatmul.mubr.msk.f32.vlgmr.msra.gmra.mxu1 %vm313_vm1, %v332_v63 }
 0x270   :  { %v408_v0 = vpop.xlane.xlu0 %407 }
 0x271   :  { %v409_v1 = vsub.f32 %v309_v43, %v408_v0 }
 0x273   :  { %v410_v2 = vmul.f32 1.442695, %v409_v1 }
 0x275   :  { %694 = vpow2.f32 %v410_v2 }
 0x282   :  { %v695_v3 = vpop.eup %694 }
 0x283   :  { %v412_v4 = vsel %vm313_vm1, %v695_v3, 0.0 }
 0x284   :  { %413 = vadd.xlane.f32.xlu0 %v412_v4 }
 0x2e2   :  { %v402_v5 = vpop.f32.mrf.mxu1 }
 0x2e3   :  { %406 = vst [vmem:[#allocation7] sm:$0xff] %v402_v5 }
 0x2e4   :  { %v676_v6 = vpop.f32.mrf.mxu1 }
 0x30d   :  { %v414_v7 = vpop.xlane.xlu0 %413 }
 0x30e   :  { %696 = vrcp.f32 %v414_v7 }
 0x31b   :  { %v697_v8 = vpop.eup %696 }
 0x31c   :  { %v416_v9 = vmul.f32 %v697_v8, %v695_v3 }
 0x31e   :  { %417 = vxpose.xlu1.b32.start.end [1/1] (short) (narrow) %v416_v9, 8 }
 0x39a   :  { %v433_v10 = vpop.trf.xlu1 }
 0x39b   :  { %680 = vmatmul.mubr.msk.f32.vlgmr.msra.gmra.mxu0 %vm313_vm1, %v433_v10 }
 0x39c   :  { %749 = shalt.err (!%p746_p0)
}
 0x39d   :  { %532 = dma.vmem_to_hbm [thread:$0]  %s530_s5, 128, %s914_s6, [#allocation4]  }
 0x39e   :  { %s793_s20 = smov [#allocation8]  }
 0x39f   :  { %s539_s21 = sshll.u32 %s793_s20, 4  ;;  %s540_s21 = int_to_ptr.vmem [resolvable:$true] %s539_s21 }
 0x3a0   :  { %s758_s22 = scalar_lea.vmem %s540_s21, 128  ;;  %p763_p2 = scmp.lt.s32.totalorder %s540_s21, %s540_s21 }
 0x3a1   :  { %p759_p1 = scmp.ne.s32.totalorder %s540_s21, %s758_s22  ;;  %p764_p3 = scmp.lt.s32.totalorder %s758_s22, %s758_s22 }
 0x3a3   :  { %p765_p4 = por %p764_p3, %p763_p2 }
 0x3a5   :  { %p766_p5 = pnand %p765_p4, %p759_p1 }
 0x45b   :  { %v518_v11 = vpop.f32.mrf.mxu0 }
 0x45c   :  { %522 = vst [vmem:[#allocation8] sm:$0xff] %v518_v11 }
 0x45d   :  { %v681_v12 = vpop.f32.mrf.mxu0 }
 0x45e   :  { %769 = shalt.err (!%p766_p5)
}
 0x45f   :  { %542 = dma.vmem_to_hbm [thread:$0]  %s540_s21, 128, %s915_s7, [#allocation9]  }
 0x460   :  { %782 = dma.done.wait [#allocation4], 128  }
 0x461   :  { %783 = vsyncadd [#allocation4], 4294967168 }
 0x462   :  { %784 = dma.done.wait [#allocation9], 128  }
 0x463   :  { %785 = vsyncadd [#allocation9], 4294967168 }
 0x464   :  { %549 = vsyncpa [#allocation3], 1 }
 0x465   :  { %550 = vsyncpa [#allocation6], 1 }
 0x466   :  { %551 = vsyncpa [#allocation4], 1 }
 0x467   :  { %552 = vsyncpa [#allocation9], 1 }

</bundles_post_ra>
